<compile_context>
chip_gen: v5e
topology: v5e:2x2
jax: 0.10.0
libtpu: 0.0.40
codegen_flags: <defaults>
</compile_context>

<pallas_src>
import functools

import jax
import jax.numpy as jnp
from jax.experimental import pallas as pl
from jax.experimental.pallas import tpu as pltpu

OUT_LANES = 128  # lane-dense output slab width; logits live in lanes [0, 2)


def lstm_fused_kernel(x_ref, wih_ref, b_ref, whh_ref, wfc_ref, bfc_ref,
                      out_ref, xproj_ref, *, T, Bp, H, matmul_dtype):
    """Fused LSTM forward: input projection + serial recurrence + classifier head.

    x_ref:     (T*Bp, F)       f32  time-major, batch-padded input
    wih_ref:   (F, 4H)         f32  gate-concatenated input weights [i|f|g|o]
    b_ref:     (1, 4H)         f32  fused biases b_ih + b_hh
    whh_ref:   (H, 4H)         f32  gate-concatenated recurrent weights
    wfc_ref:   (H, OUT_LANES)  f32  head weights, lane-padded (cols [0,2) valid)
    bfc_ref:   (1, OUT_LANES)  f32  head bias, lane-padded
    out_ref:   (Bp, OUT_LANES) f32  lane-dense output slab (logits in cols [0,2))
    xproj_ref: (T*Bp, 4H)      f32  VMEM scratch for the hoisted input projection
    """
    G = 4 * H

    # (1) Time-invariant input projection: ONE MXU matmul, no dependence on h, so it
    #     stays off the serial critical path but inside the kernel (no extra dispatch).
    xproj_ref[...] = (
        jnp.dot(x_ref[...].astype(matmul_dtype), wih_ref[...].astype(matmul_dtype),
                preferred_element_type=jnp.float32)
        + b_ref[...])

    # Hoisted out of the unrolled loop: weights (cast once) and the g-gate lane mask.
    whh = whh_ref[...].astype(matmul_dtype)          # (H, 4H)
    wfc = wfc_ref[...].astype(matmul_dtype)          # (H, OUT_LANES)
    lane = jax.lax.broadcasted_iota(jnp.int32, (Bp, G), 1)
    g_scale = jnp.where((lane >= 2 * H) & (lane < 3 * H), 2.0, 1.0)  # 2x on g lanes

    # h0 = c0 = zeros (matches the module's Variable(torch.zeros(...))).
    h = jnp.zeros((Bp, H), jnp.float32)
    c = jnp.zeros((Bp, H), jnp.float32)

    # (2) Serial recurrence: static unroll over small fixed T; one fused lane-dense
    #     (Bp, H) @ (H, 4H=128) MXU matmul + one full-width sigmoid + one tanh per step.
    for t in range(T):
        pre = xproj_ref[t * Bp:(t + 1) * Bp, :] + jnp.dot(
            h.astype(matmul_dtype), whh, preferred_element_type=jnp.float32)
        s = jax.nn.sigmoid(pre * g_scale)            # ONE 128-lane EUP pass
        # torch.nn.LSTM gate order: i, f, g, o (static lane slices of the sigmoid vreg)
        i_g = s[:, 0 * H:1 * H]
        f_g = s[:, 1 * H:2 * H]
        g_g = 2.0 * s[:, 2 * H:3 * H] - 1.0          # tanh(g) = 2*sigmoid(2g) - 1
        o_g = s[:, 3 * H:4 * H]
        c = f_g * c + i_g * g_g
        h = o_g * jnp.tanh(c)

    # (3) Classifier head fused in-kernel; lane-dense (Bp, 128) store, sliced outside.
    out_ref[...] = jnp.dot(h.astype(matmul_dtype), wfc,
                           preferred_element_type=jnp.float32) + bfc_ref[...]


def lstm_forward(x, params, *, matmul_dtype=jnp.float32):
    """x: (B, T, F) batch_first, like the PyTorch module. Returns (B, 2) f32."""
    B, T, F = x.shape
    H = params["whh"].shape[0]
    G = 4 * H
    Bp = ((B + 7) // 8) * 8                    # pad batch to a full sublane tile

    # Time-major, batch-padded, flattened input (cheap layout plumbing; no HBM matmul
    # materialization outside the kernel anymore).
    x_tm = jnp.zeros((T, Bp, F), jnp.float32).at[:, :B, :].set(
        jnp.transpose(x.astype(jnp.float32), (1, 0, 2)))
    x_flat = x_tm.reshape(T * Bp, F)

    # Lane-pad the tiny head params so the kernel writes a lane-dense output slab.
    wfc_pad = jnp.zeros((H, OUT_LANES), jnp.float32).at[:, :2].set(params["wfc"])
    bfc_pad = jnp.zeros((1, OUT_LANES), jnp.float32).at[:, :2].set(params["bfc"])

    kernel = functools.partial(lstm_fused_kernel, T=T, Bp=Bp, H=H,
                               matmul_dtype=matmul_dtype)
    out_slab = pl.pallas_call(
        kernel,
        out_shape=jax.ShapeDtypeStruct((Bp, OUT_LANES), jnp.float32),
        # Single gridless invocation: the whole (tiny) problem is VMEM-resident.
        in_specs=[pl.BlockSpec(memory_space=pltpu.MemorySpace.VMEM)] * 6,
        out_specs=pl.BlockSpec(memory_space=pltpu.MemorySpace.VMEM),
        scratch_shapes=[pltpu.VMEM((T * Bp, G), jnp.float32)],   # xproj scratch
    )(x_flat, params["wih"], params["b"], params["whh"], wfc_pad, bfc_pad)

    return out_slab[:B, :2]


def lstm_ref(x, params):
    """Pure-JAX reference with identical semantics (for verification)."""
    B, T, F = x.shape
    H = params["whh"].shape[0]

    def step(carry, xt):
        h, c = carry
        gates = xt @ params["wih"] + h @ params["whh"] + params["b"]
        i = jax.nn.sigmoid(gates[:, :H])
        f = jax.nn.sigmoid(gates[:, H:2 * H])
        g = jnp.tanh(gates[:, 2 * H:3 * H])
        o = jax.nn.sigmoid(gates[:, 3 * H:])
        c = f * c + i * g
        h = o * jnp.tanh(c)
        return (h, c), None

    init = (jnp.zeros((B, H), jnp.float32), jnp.zeros((B, H), jnp.float32))
    (h, _), _ = jax.lax.scan(step, init, jnp.transpose(x, (1, 0, 2)))
    return h @ params["wfc"] + params["bfc"]


def init_params(key, feature_dim, hidden_size):
    """Deterministic init mirroring PyTorch parameter shapes, stored gate-fused."""
    F, H = feature_dim, hidden_size
    k = 1.0 / jnp.sqrt(jnp.float32(H))
    ks = jax.random.split(key, 6)
    # torch layout: weight_ih_l0 (4H, F), weight_hh_l0 (4H, H), gate order i,f,g,o
    w_ih = jax.random.uniform(ks[0], (4 * H, F), jnp.float32, -k, k)
    w_hh = jax.random.uniform(ks[1], (4 * H, H), jnp.float32, -k, k)
    b_ih = jax.random.uniform(ks[2], (4 * H,), jnp.float32, -k, k)
    b_hh = jax.random.uniform(ks[3], (4 * H,), jnp.float32, -k, k)
    w_fc = jax.random.uniform(ks[4], (2, H), jnp.float32, -k, k)
    b_fc = jax.random.uniform(ks[5], (2,), jnp.float32, -k, k)
    return {
        "wih": w_ih.T,                      # (F, 4H)  gate-concatenated [i|f|g|o]
        "whh": w_hh.T,                      # (H, 4H)
        "b": (b_ih + b_hh)[None, :],        # (1, 4H)  fused biases
        "wfc": w_fc.T,                      # (H, 2)
        "bfc": b_fc[None, :],               # (1, 2)
    }


if __name__ == "__main__":
    B, T, F, H = 2, 8, 16, 32
    key = jax.random.PRNGKey(0)
    kx, kp = jax.random.split(key)
    x = jax.random.normal(kx, (B, T, F), jnp.float32)
    params = init_params(kp, F, H)

    ref = lstm_ref(x, params)

    # f32 path: exact-semantics check.
    out = jax.block_until_ready(jax.jit(lstm_forward)(x, params))
    assert out.shape == (B, 2)
    assert jnp.allclose(out, ref, atol=1e-5, rtol=1e-5), (out, ref)

    # bf16 MXU-operand path (state / gates stay f32): loose tolerance.
    out_bf16 = jax.block_until_ready(
        jax.jit(functools.partial(lstm_forward, matmul_dtype=jnp.bfloat16))(x, params))
    assert jnp.allclose(out_bf16, ref, atol=5e-2, rtol=5e-2), (out_bf16, ref)

    print("KERNEL_OK")
</pallas_src>

<mosaic_0001>
module attributes {stable_mosaic.version = 11 : i64} {
  func.func @lstm_fused_kernel(%arg0: memref<64x16xf32, #tpu.memory_space<vmem>>, %arg1: memref<16x128xf32, #tpu.memory_space<vmem>>, %arg2: memref<1x128xf32, #tpu.memory_space<vmem>>, %arg3: memref<32x128xf32, #tpu.memory_space<vmem>>, %arg4: memref<32x128xf32, #tpu.memory_space<vmem>>, %arg5: memref<1x128xf32, #tpu.memory_space<vmem>>, %arg6: memref<8x128xf32, #tpu.memory_space<vmem>>, %arg7: memref<64x128xf32, #tpu.memory_space<vmem>>) attributes {dimension_semantics = [], scalar_prefetch = 0 : i64, scratch_operands = 1 : i64, tpu.core_type = #tpu.core_type<tc>} {
    %c0 = arith.constant 0 : index
    %c0_0 = arith.constant 0 : index
    %0 = vector.load %arg0[%c0, %c0_0] : memref<64x16xf32, #tpu.memory_space<vmem>>, vector<64x16xf32>
    %c0_1 = arith.constant 0 : index
    %c0_2 = arith.constant 0 : index
    %1 = vector.load %arg1[%c0_1, %c0_2] : memref<16x128xf32, #tpu.memory_space<vmem>>, vector<16x128xf32>
    %cst = arith.constant dense<0.000000e+00> : vector<64x128xf32>
    %2 = tpu.matmul %0, %1, %cst {dimension_numbers = #tpu.dot_dimension_numbers<[1], [0], [0], [1], [0, 0, 1, 1], [], []>} : vector<64x16xf32>, vector<16x128xf32>, vector<64x128xf32> -> vector<64x128xf32>
    %c0_3 = arith.constant 0 : index
    %c0_4 = arith.constant 0 : index
    %3 = vector.load %arg2[%c0_3, %c0_4] : memref<1x128xf32, #tpu.memory_space<vmem>>, vector<1x128xf32>
    %4 = vector.broadcast %3 : vector<1x128xf32> to vector<64x128xf32>
    %5 = arith.addf %2, %4 : vector<64x128xf32>
    %c0_5 = arith.constant 0 : index
    %c0_6 = arith.constant 0 : index
    %6 = vector.load %arg7[%c0_5, %c0_6] : memref<64x128xf32, #tpu.memory_space<vmem>>, vector<64x128xf32>
    tpu.vector_store %arg7[%c0_5, %c0_6], %5 {strides = array<i32>} : memref<64x128xf32, #tpu.memory_space<vmem>>, vector<64x128xf32>,
    %c0_7 = arith.constant 0 : index
    %c0_8 = arith.constant 0 : index
    %7 = vector.load %arg3[%c0_7, %c0_8] : memref<32x128xf32, #tpu.memory_space<vmem>>, vector<32x128xf32>
    %c0_9 = arith.constant 0 : index
    %c0_10 = arith.constant 0 : index
    %8 = vector.load %arg4[%c0_9, %c0_10] : memref<32x128xf32, #tpu.memory_space<vmem>>, vector<32x128xf32>
    %9 = tpu.iota {dimensions = array<i32: 1>} : vector<8x128xi32>
    %c64_i32 = arith.constant 64 : i32
    %10 = vector.broadcast %c64_i32 : i32 to vector<8x128xi32>
    %11 = arith.cmpi sge, %9, %10 : vector<8x128xi32>
    %c96_i32 = arith.constant 96 : i32
    %12 = vector.broadcast %c96_i32 : i32 to vector<8x128xi32>
    %13 = arith.cmpi slt, %9, %12 : vector<8x128xi32>
    %14 = arith.andi %11, %13 : vector<8x128xi1>
    %cst_11 = arith.constant 2.000000e+00 : f32
    %cst_12 = arith.constant 1.000000e+00 : f32
    %15 = vector.broadcast %cst_11 : f32 to vector<8x128xf32>
    %16 = vector.broadcast %cst_12 : f32 to vector<8x128xf32>
    %17 = arith.select %14, %15, %16 : vector<8x128xi1>, vector<8x128xf32>
    %cst_13 = arith.constant 0.000000e+00 : f32
    %18 = vector.broadcast %cst_13 : f32 to vector<8x32xf32>
    %cst_14 = arith.constant 0.000000e+00 : f32
    %19 = vector.broadcast %cst_14 : f32 to vector<8x32xf32>
    %c0_15 = arith.constant 0 : index
    %c0_16 = arith.constant 0 : index
    %20 = vector.load %arg7[%c0_15, %c0_16] : memref<64x128xf32, #tpu.memory_space<vmem>>, vector<8x128xf32>
    %cst_17 = arith.constant dense<0.000000e+00> : vector<8x128xf32>
    %21 = tpu.matmul %18, %7, %cst_17 {dimension_numbers = #tpu.dot_dimension_numbers<[1], [0], [0], [1], [0, 0, 1, 1], [], []>} : vector<8x32xf32>, vector<32x128xf32>, vector<8x128xf32> -> vector<8x128xf32>
    %22 = arith.addf %20, %21 : vector<8x128xf32>
    %23 = arith.mulf %22, %17 : vector<8x128xf32>
    %24 = arith.negf %23 : vector<8x128xf32>
    %25 = math.exp %24 : vector<8x128xf32>
    %cst_18 = arith.constant 1.000000e+00 : f32
    %26 = vector.broadcast %cst_18 : f32 to vector<8x128xf32>
    %27 = arith.addf %26, %25 : vector<8x128xf32>
    %28 = arith.divf %26, %27 : vector<8x128xf32>
    %29 = vector.extract_strided_slice %28 {offsets = [0, 0], sizes = [8, 32], strides = [1, 1]} : vector<8x128xf32> to vector<8x32xf32>
    %30 = vector.extract_strided_slice %28 {offsets = [0, 32], sizes = [8, 32], strides = [1, 1]} : vector<8x128xf32> to vector<8x32xf32>
    %31 = vector.extract_strided_slice %28 {offsets = [0, 64], sizes = [8, 32], strides = [1, 1]} : vector<8x128xf32> to vector<8x32xf32>
    %cst_19 = arith.constant 2.000000e+00 : f32
    %32 = vector.broadcast %cst_19 : f32 to vector<8x32xf32>
    %33 = arith.mulf %32, %31 : vector<8x32xf32>
    %cst_20 = arith.constant 1.000000e+00 : f32
    %34 = vector.broadcast %cst_20 : f32 to vector<8x32xf32>
    %35 = arith.subf %33, %34 : vector<8x32xf32>
    %36 = vector.extract_strided_slice %28 {offsets = [0, 96], sizes = [8, 32], strides = [1, 1]} : vector<8x128xf32> to vector<8x32xf32>
    %37 = arith.mulf %30, %19 : vector<8x32xf32>
    %38 = arith.mulf %29, %35 : vector<8x32xf32>
    %39 = arith.addf %37, %38 : vector<8x32xf32>
    %40 = math.tanh %39 : vector<8x32xf32>
    %41 = arith.mulf %36, %40 : vector<8x32xf32>
    %c8 = arith.constant 8 : index
    %c0_21 = arith.constant 0 : index
    %42 = vector.load %arg7[%c8, %c0_21] : memref<64x128xf32, #tpu.memory_space<vmem>>, vector<8x128xf32>
    %cst_22 = arith.constant dense<0.000000e+00> : vector<8x128xf32>
    %43 = tpu.matmul %41, %7, %cst_22 {dimension_numbers = #tpu.dot_dimension_numbers<[1], [0], [0], [1], [0, 0, 1, 1], [], []>} : vector<8x32xf32>, vector<32x128xf32>, vector<8x128xf32> -> vector<8x128xf32>
    %44 = arith.addf %42, %43 : vector<8x128xf32>
    %45 = arith.mulf %44, %17 : vector<8x128xf32>
    %46 = arith.negf %45 : vector<8x128xf32>
    %47 = math.exp %46 : vector<8x128xf32>
    %cst_23 = arith.constant 1.000000e+00 : f32
    %48 = vector.broadcast %cst_23 : f32 to vector<8x128xf32>
    %49 = arith.addf %48, %47 : vector<8x128xf32>
    %50 = arith.divf %48, %49 : vector<8x128xf32>
    %51 = vector.extract_strided_slice %50 {offsets = [0, 0], sizes = [8, 32], strides = [1, 1]} : vector<8x128xf32> to vector<8x32xf32>
    %52 = vector.extract_strided_slice %50 {offsets = [0, 32], sizes = [8, 32], strides = [1, 1]} : vector<8x128xf32> to vector<8x32xf32>
    %53 = vector.extract_strided_slice %50 {offsets = [0, 64], sizes = [8, 32], strides = [1, 1]} : vector<8x128xf32> to vector<8x32xf32>
    %cst_24 = arith.constant 2.000000e+00 : f32
    %54 = vector.broadcast %cst_24 : f32 to vector<8x32xf32>
    %55 = arith.mulf %54, %53 : vector<8x32xf32>
    %cst_25 = arith.constant 1.000000e+00 : f32
    %56 = vector.broadcast %cst_25 : f32 to vector<8x32xf32>
    %57 = arith.subf %55, %56 : vector<8x32xf32>
    %58 = vector.extract_strided_slice %50 {offsets = [0, 96], sizes = [8, 32], strides = [1, 1]} : vector<8x128xf32> to vector<8x32xf32>
    %59 = arith.mulf %52, %39 : vector<8x32xf32>
    %60 = arith.mulf %51, %57 : vector<8x32xf32>
    %61 = arith.addf %59, %60 : vector<8x32xf32>
    %62 = math.tanh %61 : vector<8x32xf32>
    %63 = arith.mulf %58, %62 : vector<8x32xf32>
    %c16 = arith.constant 16 : index
    %c0_26 = arith.constant 0 : index
    %64 = vector.load %arg7[%c16, %c0_26] : memref<64x128xf32, #tpu.memory_space<vmem>>, vector<8x128xf32>
    %cst_27 = arith.constant dense<0.000000e+00> : vector<8x128xf32>
    %65 = tpu.matmul %63, %7, %cst_27 {dimension_numbers = #tpu.dot_dimension_numbers<[1], [0], [0], [1], [0, 0, 1, 1], [], []>} : vector<8x32xf32>, vector<32x128xf32>, vector<8x128xf32> -> vector<8x128xf32>
    %66 = arith.addf %64, %65 : vector<8x128xf32>
    %67 = arith.mulf %66, %17 : vector<8x128xf32>
    %68 = arith.negf %67 : vector<8x128xf32>
    %69 = math.exp %68 : vector<8x128xf32>
    %cst_28 = arith.constant 1.000000e+00 : f32
    %70 = vector.broadcast %cst_28 : f32 to vector<8x128xf32>
    %71 = arith.addf %70, %69 : vector<8x128xf32>
    %72 = arith.divf %70, %71 : vector<8x128xf32>
    %73 = vector.extract_strided_slice %72 {offsets = [0, 0], sizes = [8, 32], strides = [1, 1]} : vector<8x128xf32> to vector<8x32xf32>
    %74 = vector.extract_strided_slice %72 {offsets = [0, 32], sizes = [8, 32], strides = [1, 1]} : vector<8x128xf32> to vector<8x32xf32>
    %75 = vector.extract_strided_slice %72 {offsets = [0, 64], sizes = [8, 32], strides = [1, 1]} : vector<8x128xf32> to vector<8x32xf32>
    %cst_29 = arith.constant 2.000000e+00 : f32
    %76 = vector.broadcast %cst_29 : f32 to vector<8x32xf32>
    %77 = arith.mulf %76, %75 : vector<8x32xf32>
    %cst_30 = arith.constant 1.000000e+00 : f32
    %78 = vector.broadcast %cst_30 : f32 to vector<8x32xf32>
    %79 = arith.subf %77, %78 : vector<8x32xf32>
    %80 = vector.extract_strided_slice %72 {offsets = [0, 96], sizes = [8, 32], strides = [1, 1]} : vector<8x128xf32> to vector<8x32xf32>
    %81 = arith.mulf %74, %61 : vector<8x32xf32>
    %82 = arith.mulf %73, %79 : vector<8x32xf32>
    %83 = arith.addf %81, %82 : vector<8x32xf32>
    %84 = math.tanh %83 : vector<8x32xf32>
    %85 = arith.mulf %80, %84 : vector<8x32xf32>
    %c24 = arith.constant 24 : index
    %c0_31 = arith.constant 0 : index
    %86 = vector.load %arg7[%c24, %c0_31] : memref<64x128xf32, #tpu.memory_space<vmem>>, vector<8x128xf32>
    %cst_32 = arith.constant dense<0.000000e+00> : vector<8x128xf32>
    %87 = tpu.matmul %85, %7, %cst_32 {dimension_numbers = #tpu.dot_dimension_numbers<[1], [0], [0], [1], [0, 0, 1, 1], [], []>} : vector<8x32xf32>, vector<32x128xf32>, vector<8x128xf32> -> vector<8x128xf32>
    %88 = arith.addf %86, %87 : vector<8x128xf32>
    %89 = arith.mulf %88, %17 : vector<8x128xf32>
    %90 = arith.negf %89 : vector<8x128xf32>
    %91 = math.exp %90 : vector<8x128xf32>
    %cst_33 = arith.constant 1.000000e+00 : f32
    %92 = vector.broadcast %cst_33 : f32 to vector<8x128xf32>
    %93 = arith.addf %92, %91 : vector<8x128xf32>
    %94 = arith.divf %92, %93 : vector<8x128xf32>
    %95 = vector.extract_strided_slice %94 {offsets = [0, 0], sizes = [8, 32], strides = [1, 1]} : vector<8x128xf32> to vector<8x32xf32>
    %96 = vector.extract_strided_slice %94 {offsets = [0, 32], sizes = [8, 32], strides = [1, 1]} : vector<8x128xf32> to vector<8x32xf32>
    %97 = vector.extract_strided_slice %94 {offsets = [0, 64], sizes = [8, 32], strides = [1, 1]} : vector<8x128xf32> to vector<8x32xf32>
    %cst_34 = arith.constant 2.000000e+00 : f32
    %98 = vector.broadcast %cst_34 : f32 to vector<8x32xf32>
    %99 = arith.mulf %98, %97 : vector<8x32xf32>
    %cst_35 = arith.constant 1.000000e+00 : f32
    %100 = vector.broadcast %cst_35 : f32 to vector<8x32xf32>
    %101 = arith.subf %99, %100 : vector<8x32xf32>
    %102 = vector.extract_strided_slice %94 {offsets = [0, 96], sizes = [8, 32], strides = [1, 1]} : vector<8x128xf32> to vector<8x32xf32>
    %103 = arith.mulf %96, %83 : vector<8x32xf32>
    %104 = arith.mulf %95, %101 : vector<8x32xf32>
    %105 = arith.addf %103, %104 : vector<8x32xf32>
    %106 = math.tanh %105 : vector<8x32xf32>
    %107 = arith.mulf %102, %106 : vector<8x32xf32>
    %c32 = arith.constant 32 : index
    %c0_36 = arith.constant 0 : index
    %108 = vector.load %arg7[%c32, %c0_36] : memref<64x128xf32, #tpu.memory_space<vmem>>, vector<8x128xf32>
    %cst_37 = arith.constant dense<0.000000e+00> : vector<8x128xf32>
    %109 = tpu.matmul %107, %7, %cst_37 {dimension_numbers = #tpu.dot_dimension_numbers<[1], [0], [0], [1], [0, 0, 1, 1], [], []>} : vector<8x32xf32>, vector<32x128xf32>, vector<8x128xf32> -> vector<8x128xf32>
    %110 = arith.addf %108, %109 : vector<8x128xf32>
    %111 = arith.mulf %110, %17 : vector<8x128xf32>
    %112 = arith.negf %111 : vector<8x128xf32>
    %113 = math.exp %112 : vector<8x128xf32>
    %cst_38 = arith.constant 1.000000e+00 : f32
    %114 = vector.broadcast %cst_38 : f32 to vector<8x128xf32>
    %115 = arith.addf %114, %113 : vector<8x128xf32>
    %116 = arith.divf %114, %115 : vector<8x128xf32>
    %117 = vector.extract_strided_slice %116 {offsets = [0, 0], sizes = [8, 32], strides = [1, 1]} : vector<8x128xf32> to vector<8x32xf32>
    %118 = vector.extract_strided_slice %116 {offsets = [0, 32], sizes = [8, 32], strides = [1, 1]} : vector<8x128xf32> to vector<8x32xf32>
    %119 = vector.extract_strided_slice %116 {offsets = [0, 64], sizes = [8, 32], strides = [1, 1]} : vector<8x128xf32> to vector<8x32xf32>
    %cst_39 = arith.constant 2.000000e+00 : f32
    %120 = vector.broadcast %cst_39 : f32 to vector<8x32xf32>
    %121 = arith.mulf %120, %119 : vector<8x32xf32>
    %cst_40 = arith.constant 1.000000e+00 : f32
    %122 = vector.broadcast %cst_40 : f32 to vector<8x32xf32>
    %123 = arith.subf %121, %122 : vector<8x32xf32>
    %124 = vector.extract_strided_slice %116 {offsets = [0, 96], sizes = [8, 32], strides = [1, 1]} : vector<8x128xf32> to vector<8x32xf32>
    %125 = arith.mulf %118, %105 : vector<8x32xf32>
    %126 = arith.mulf %117, %123 : vector<8x32xf32>
    %127 = arith.addf %125, %126 : vector<8x32xf32>
    %128 = math.tanh %127 : vector<8x32xf32>
    %129 = arith.mulf %124, %128 : vector<8x32xf32>
    %c40 = arith.constant 40 : index
    %c0_41 = arith.constant 0 : index
    %130 = vector.load %arg7[%c40, %c0_41] : memref<64x128xf32, #tpu.memory_space<vmem>>, vector<8x128xf32>
    %cst_42 = arith.constant dense<0.000000e+00> : vector<8x128xf32>
    %131 = tpu.matmul %129, %7, %cst_42 {dimension_numbers = #tpu.dot_dimension_numbers<[1], [0], [0], [1], [0, 0, 1, 1], [], []>} : vector<8x32xf32>, vector<32x128xf32>, vector<8x128xf32> -> vector<8x128xf32>
    %132 = arith.addf %130, %131 : vector<8x128xf32>
    %133 = arith.mulf %132, %17 : vector<8x128xf32>
    %134 = arith.negf %133 : vector<8x128xf32>
    %135 = math.exp %134 : vector<8x128xf32>
    %cst_43 = arith.constant 1.000000e+00 : f32
    %136 = vector.broadcast %cst_43 : f32 to vector<8x128xf32>
    %137 = arith.addf %136, %135 : vector<8x128xf32>
    %138 = arith.divf %136, %137 : vector<8x128xf32>
    %139 = vector.extract_strided_slice %138 {offsets = [0, 0], sizes = [8, 32], strides = [1, 1]} : vector<8x128xf32> to vector<8x32xf32>
    %140 = vector.extract_strided_slice %138 {offsets = [0, 32], sizes = [8, 32], strides = [1, 1]} : vector<8x128xf32> to vector<8x32xf32>
    %141 = vector.extract_strided_slice %138 {offsets = [0, 64], sizes = [8, 32], strides = [1, 1]} : vector<8x128xf32> to vector<8x32xf32>
    %cst_44 = arith.constant 2.000000e+00 : f32
    %142 = vector.broadcast %cst_44 : f32 to vector<8x32xf32>
    %143 = arith.mulf %142, %141 : vector<8x32xf32>
    %cst_45 = arith.constant 1.000000e+00 : f32
    %144 = vector.broadcast %cst_45 : f32 to vector<8x32xf32>
    %145 = arith.subf %143, %144 : vector<8x32xf32>
    %146 = vector.extract_strided_slice %138 {offsets = [0, 96], sizes = [8, 32], strides = [1, 1]} : vector<8x128xf32> to vector<8x32xf32>
    %147 = arith.mulf %140, %127 : vector<8x32xf32>
    %148 = arith.mulf %139, %145 : vector<8x32xf32>
    %149 = arith.addf %147, %148 : vector<8x32xf32>
    %150 = math.tanh %149 : vector<8x32xf32>
    %151 = arith.mulf %146, %150 : vector<8x32xf32>
    %c48 = arith.constant 48 : index
    %c0_46 = arith.constant 0 : index
    %152 = vector.load %arg7[%c48, %c0_46] : memref<64x128xf32, #tpu.memory_space<vmem>>, vector<8x128xf32>
    %cst_47 = arith.constant dense<0.000000e+00> : vector<8x128xf32>
    %153 = tpu.matmul %151, %7, %cst_47 {dimension_numbers = #tpu.dot_dimension_numbers<[1], [0], [0], [1], [0, 0, 1, 1], [], []>} : vector<8x32xf32>, vector<32x128xf32>, vector<8x128xf32> -> vector<8x128xf32>
    %154 = arith.addf %152, %153 : vector<8x128xf32>
    %155 = arith.mulf %154, %17 : vector<8x128xf32>
    %156 = arith.negf %155 : vector<8x128xf32>
    %157 = math.exp %156 : vector<8x128xf32>
    %cst_48 = arith.constant 1.000000e+00 : f32
    %158 = vector.broadcast %cst_48 : f32 to vector<8x128xf32>
    %159 = arith.addf %158, %157 : vector<8x128xf32>
    %160 = arith.divf %158, %159 : vector<8x128xf32>
    %161 = vector.extract_strided_slice %160 {offsets = [0, 0], sizes = [8, 32], strides = [1, 1]} : vector<8x128xf32> to vector<8x32xf32>
    %162 = vector.extract_strided_slice %160 {offsets = [0, 32], sizes = [8, 32], strides = [1, 1]} : vector<8x128xf32> to vector<8x32xf32>
    %163 = vector.extract_strided_slice %160 {offsets = [0, 64], sizes = [8, 32], strides = [1, 1]} : vector<8x128xf32> to vector<8x32xf32>
    %cst_49 = arith.constant 2.000000e+00 : f32
    %164 = vector.broadcast %cst_49 : f32 to vector<8x32xf32>
    %165 = arith.mulf %164, %163 : vector<8x32xf32>
    %cst_50 = arith.constant 1.000000e+00 : f32
    %166 = vector.broadcast %cst_50 : f32 to vector<8x32xf32>
    %167 = arith.subf %165, %166 : vector<8x32xf32>
    %168 = vector.extract_strided_slice %160 {offsets = [0, 96], sizes = [8, 32], strides = [1, 1]} : vector<8x128xf32> to vector<8x32xf32>
    %169 = arith.mulf %162, %149 : vector<8x32xf32>
    %170 = arith.mulf %161, %167 : vector<8x32xf32>
    %171 = arith.addf %169, %170 : vector<8x32xf32>
    %172 = math.tanh %171 : vector<8x32xf32>
    %173 = arith.mulf %168, %172 : vector<8x32xf32>
    %c56 = arith.constant 56 : index
    %c0_51 = arith.constant 0 : index
    %174 = vector.load %arg7[%c56, %c0_51] : memref<64x128xf32, #tpu.memory_space<vmem>>, vector<8x128xf32>
    %cst_52 = arith.constant dense<0.000000e+00> : vector<8x128xf32>
    %175 = tpu.matmul %173, %7, %cst_52 {dimension_numbers = #tpu.dot_dimension_numbers<[1], [0], [0], [1], [0, 0, 1, 1], [], []>} : vector<8x32xf32>, vector<32x128xf32>, vector<8x128xf32> -> vector<8x128xf32>
    %176 = arith.addf %174, %175 : vector<8x128xf32>
    %177 = arith.mulf %176, %17 : vector<8x128xf32>
    %178 = arith.negf %177 : vector<8x128xf32>
    %179 = math.exp %178 : vector<8x128xf32>
    %cst_53 = arith.constant 1.000000e+00 : f32
    %180 = vector.broadcast %cst_53 : f32 to vector<8x128xf32>
    %181 = arith.addf %180, %179 : vector<8x128xf32>
    %182 = arith.divf %180, %181 : vector<8x128xf32>
    %183 = vector.extract_strided_slice %182 {offsets = [0, 0], sizes = [8, 32], strides = [1, 1]} : vector<8x128xf32> to vector<8x32xf32>
    %184 = vector.extract_strided_slice %182 {offsets = [0, 32], sizes = [8, 32], strides = [1, 1]} : vector<8x128xf32> to vector<8x32xf32>
    %185 = vector.extract_strided_slice %182 {offsets = [0, 64], sizes = [8, 32], strides = [1, 1]} : vector<8x128xf32> to vector<8x32xf32>
    %cst_54 = arith.constant 2.000000e+00 : f32
    %186 = vector.broadcast %cst_54 : f32 to vector<8x32xf32>
    %187 = arith.mulf %186, %185 : vector<8x32xf32>
    %cst_55 = arith.constant 1.000000e+00 : f32
    %188 = vector.broadcast %cst_55 : f32 to vector<8x32xf32>
    %189 = arith.subf %187, %188 : vector<8x32xf32>
    %190 = vector.extract_strided_slice %182 {offsets = [0, 96], sizes = [8, 32], strides = [1, 1]} : vector<8x128xf32> to vector<8x32xf32>
    %191 = arith.mulf %184, %171 : vector<8x32xf32>
    %192 = arith.mulf %183, %189 : vector<8x32xf32>
    %193 = arith.addf %191, %192 : vector<8x32xf32>
    %194 = math.tanh %193 : vector<8x32xf32>
    %195 = arith.mulf %190, %194 : vector<8x32xf32>
    %cst_56 = arith.constant dense<0.000000e+00> : vector<8x128xf32>
    %196 = tpu.matmul %195, %8, %cst_56 {dimension_numbers = #tpu.dot_dimension_numbers<[1], [0], [0], [1], [0, 0, 1, 1], [], []>} : vector<8x32xf32>, vector<32x128xf32>, vector<8x128xf32> -> vector<8x128xf32>
    %c0_57 = arith.constant 0 : index
    %c0_58 = arith.constant 0 : index
    %197 = vector.load %arg5[%c0_57, %c0_58] : memref<1x128xf32, #tpu.memory_space<vmem>>, vector<1x128xf32>
    %198 = vector.broadcast %197 : vector<1x128xf32> to vector<8x128xf32>
    %199 = arith.addf %196, %198 : vector<8x128xf32>
    %c0_59 = arith.constant 0 : index
    %c0_60 = arith.constant 0 : index
    %200 = vector.load %arg6[%c0_59, %c0_60] : memref<8x128xf32, #tpu.memory_space<vmem>>, vector<8x128xf32>
    tpu.vector_store %arg6[%c0_59, %c0_60], %199 {strides = array<i32>} : memref<8x128xf32, #tpu.memory_space<vmem>>, vector<8x128xf32>,
    return
  }
}

</mosaic_0001>

<bundles_post_ra>
// kernel: lstm_forward.1
= control target key start
LH: loop header
LB: loop body
LE: loop exit
PB: predicated region body
PF: predicated region fallthrough
CT: control target
= control target key end

     0   :  { %vm37_vm0 = vcmask 130048   ;;  %v776_v8 = vmov 0.0   ;;  %v119_v9 = vlaneseq  ;;  %v777_v15 = vmov 1.0   ;;  %s779_s13 = smov 32   ;;  %s995_s1 = inlined_call_operand.vmem [shape: f32[16,128], index: 1, kind: input, shape index: {}]   ;;  %s996_s0 = inlined_call_operand.vmem [shape: f32[64,16], index: 0, kind: input, shape index: {}]   ;;  %s997_s3 = inlined_call_operand.vmem [shape: f32[32,128], index: 3, kind: input, shape index: {}]   ;;  %s998_s2 = inlined_call_operand.vmem [shape: f32[1,128], index: 2, kind: input, shape index: {}]   ;;  %s999_s4 = inlined_call_operand.vmem [shape: f32[32,128], index: 4, kind: input, shape index: {}]   ;;  %s1000_s5 = inlined_call_operand.vmem [shape: f32[1,128], index: 5, kind: input, shape index: {}]   ;;  %s1001_s6 = inlined_call_operand.vmem [shape: f32[8,128], index: 6, kind: output, shape index: {}]  }
   0x1   :  { %v32_v0 = vld [vmem:[%s995_s1 + $0x8] sm:$0xff]  ;;  %v31_v1 = vld [vmem:[%s995_s1] sm:$0xff]  ;;  %v827_v3 = vld [vmem:[%s997_s3 + $0x18] sm:$0xff]  ;;  %vm126_vm8 = vcmask 261120  }
   0x2   :  { %718 = vmatpush.msra.mxu1 %v32_v0  ;;  %v28_v2 = vld [vmem:[%s996_s0 + $0x28] sm:$0xff]  ;;  %76 = vmatpush.msra.mxu0 %v32_v0  ;;  %v23_v4 = vld [vmem:[%s996_s0] sm:$0xff]  ;;  %v837_v5 = vld [vmem:[%s997_s3 + $0x10] sm:$0xff]  ;;  %v120_v10 = vand.u32 127, %v119_v9 }
   0x3   :  { %719 = vmatpush.msra.mxu2 %v32_v0  ;;  %274 = vmatpush.msra.mxu3 %v827_v3  ;;  %v844_v6 = vld [vmem:[%s997_s3 + $0x8] sm:$0xff]  ;;  %v852_v7 = vld [vmem:[%s997_s3] sm:$0xff]  ;;  %v29_v41 = vld [vmem:[%s996_s0 + $0x30] sm:$0xff] }
   0x4   :  { %720 = vmatpush.msra.mxu1 %v31_v1  ;;  %77 = vmatpush.msra.mxu0 %v31_v1  ;;  %vm121_vm1 = vcmp.ge.s32.totalorder %v120_v10, 64  ;;  %vm122_vm2 = vcmp.lt.s32.totalorder %v120_v10, 96  ;;  %v878_v13 = vld [vmem:[%s998_s2] ss:$0 sm:$0xff]  ;;  %s778_s2 = smov 64   ;;  %v30_v42 = vld [vmem:[%s996_s0 + $0x38] sm:$0xff] }
   0x5   :  { %691 = vmatmul.msk.f32.vlgmr.msra.gmra.mxu1 %vm37_vm0, %v28_v2  ;;  %686 = vmatmul.msk.f32.vlgmr.msra.gmra.mxu0 %vm37_vm0, %v23_v4  ;;  %vm123_vm3 = vmand %vm121_vm1, %vm122_vm2  ;;  %v24_v45 = vld [vmem:[%s996_s0 + $0x8] sm:$0xff] }
   0x6   :  { %142 = vmatpush.msrb.mxu1 %v827_v3  ;;  %721 = vmatpush.msra.mxu2 %v31_v1  ;;  %v881_v16 = vsel %vm123_vm3, 2.0, %v777_v15  ;;  %v25_v15 = vld [vmem:[%s996_s0 + $0x10] sm:$0xff] }
   0x7   :  { %275 = vmatpush.msra.mxu3 %v837_v5  ;;  %692 = vmatmul.msk.f32.vlgmr.msra.gmra.mxu2 %vm37_vm0, %v29_v41 }
   0x8   :  { %208 = vmatpush.msrb.mxu2 %v827_v3  ;;  %143 = vmatpush.msrb.mxu1 %v837_v5 }
   0x9   :  { %276 = vmatpush.msra.mxu3 %v844_v6 }
   0xa   :  { %209 = vmatpush.msrb.mxu2 %v837_v5  ;;  %144 = vmatpush.msrb.mxu1 %v844_v6 }
   0xb   :  { %277 = vmatpush.msra.mxu3 %v852_v7 }
   0xc   :  { %210 = vmatpush.msrb.mxu2 %v844_v6  ;;  %145 = vmatpush.msrb.mxu1 %v852_v7 }
   0xd   :  { %472 = vmatpush.msrb.mxu3 %v827_v3  ;;  %146 = vmatmul.f32.vlgmr.msrb.gmra.mxu1 %v776_v8 }
   0xe   :  { %211 = vmatpush.msrb.mxu2 %v852_v7  ;;  %340 = vmatpush.msra.mxu1 %v827_v3 }
   0xf   :  { %473 = vmatpush.msrb.mxu3 %v837_v5  ;;  %693 = vmatmul.msk.f32.gmra.mxu2 %vm37_vm0, %v30_v42 }
  0x10   :  { %341 = vmatpush.msra.mxu1 %v837_v5  ;;  %406 = vmatpush.msra.mxu2 %v827_v3 }
  0x11   :  { %474 = vmatpush.msrb.mxu3 %v844_v6  ;;  %687 = vmatmul.msk.f32.gmra.mxu0 %vm37_vm0, %v24_v45 }
  0x12   :  { %342 = vmatpush.msra.mxu1 %v844_v6  ;;  %407 = vmatpush.msra.mxu2 %v837_v5 }
  0x13   :  { %475 = vmatpush.msrb.mxu3 %v852_v7 }
  0x14   :  { %343 = vmatpush.msra.mxu1 %v852_v7  ;;  %408 = vmatpush.msra.mxu2 %v844_v6 }
  0x16   :  { %538 = vmatpush.msrb.mxu1 %v827_v3  ;;  %409 = vmatpush.msra.mxu2 %v852_v7 }
  0x18   :  { %539 = vmatpush.msrb.mxu1 %v837_v5 }
  0x19   :  { %688 = vmatmul.msk.f32.gmra.mxu0 %vm37_vm0, %v25_v15 }
  0x1a   :  { %540 = vmatpush.msrb.mxu1 %v844_v6 }
  0x1c   :  { %541 = vmatpush.msrb.mxu1 %v852_v7 }
  0x82   :  { %v873_v11 = vpop.f32.mrf.mxu1  ;;  %v79_v12 = vpop.f32.mrf.mxu0 }
  0x83   :  { %v80_v14 = vadd.f32 %v878_v13, %v79_v12 }
  0x8a   :  { %v147_v17 = vpop.f32.mrf.mxu1  ;;  %v909_v47 = vpop.f32.mrf.mxu2 }
  0x8b   :  { %v150_v18 = vadd.f32 %v147_v17, %v80_v14 }
  0x8d   :  { %v151_v19 = vmul.f32 %v150_v18, %v881_v16 }
  0x8e   :  { %v82_v49 = vpop.f32.mrf.mxu0 }
  0x8f   :  { %v694_v20 = vmul.f32 -1.442695, %v151_v19  ;;  %v83_v50 = vadd.f32 %v878_v13, %v82_v49 }
  0x91   :  { %728 = vpow2.f32 %v694_v20 }
  0x92   :  { %v911_v48 = vpop.f32.mrf.mxu2 }
  0x96   :  { %v85_v18 = vpop.f32.mrf.mxu0 }
  0x97   :  { %v729_v21 = vpop.eup %728  ;;  %v86_v19 = vadd.f32 %v878_v13, %v85_v18 }
  0x98   :  { %v155_v22 = vadd.f32 1.0, %v729_v21 }
  0x9a   :  { %730 = vrcp.f32 %v155_v22  ;;  %v167_v26 = vand.u32 2147483648, %v155_v22  ;;  %v165_v28 = vand.u32 2147483647, %v155_v22  ;;  %vm161_vm5 = vweird.f32 %v155_v22 }
  0x9c   :  { %v168_v30 = vor.u32 1.1754944e-38, %v167_v26  ;;  %vm166_vm7 = vcmp.eq.f32.partialorder %v165_v28, 8.507059e+37 }
  0xa0   :  { %v731_v23 = vpop.eup %730 }
  0xa1   :  { %v157_v24 = vmul.f32 %v731_v23, %v155_v22  ;;  %vm162_vm4 = vweird.f32 %v731_v23 }
  0xa2   :  { %vm163_vm6 = vmor %vm161_vm5, %vm162_vm4 }
  0xa3   :  { %v158_v25 = vsub.f32 1.0, %v157_v24 }
  0xa5   :  { %v159_v27 = vmul.f32 %v731_v23, %v158_v25 }
  0xa7   :  { %v160_v29 = vadd.f32 %v731_v23, %v159_v27 }
  0xa9   :  { %v164_v31 = vsel %vm163_vm6, %v731_v23, %v160_v29 }
  0xaa   :  { %v169_v32 = vsel %vm166_vm7, %v168_v30, %v164_v31 }
  0xab   :  { %v171_v33 = vmul.f32 2.0, %v169_v32  ;;  %v173_v37 = vmul.f32 0.0, %v169_v32 }
  0xad   :  { %v695_v34 = vadd.f32 -1.0, %v171_v33 }
  0xaf   :  { %175 = vrot.lane.b32.xlu0 %v695_v34, %s778_s2 }
 0x121   :  { %v176_v35 = vpop.permute.xlu0 %175 }
 0x122   :  { %v178_v36 = vmul.f32 %v176_v35, %v169_v32 }
 0x124   :  { %180 = vrot.lane.b32.xlu0 %v178_v36, %s779_s13 }
 0x196   :  { %v181_v38 = vpop.permute.xlu0 %180 }
 0x197   :  { %v183_v39 = vadd.f32 %v181_v38, %v173_v37 }
 0x199   :  { %732 = vtanh.f32 %v183_v39 }
 0x19f   :  { %v733_v40 = vpop.eup %732 }
 0x1a0   :  { %186 = vrot.lane.b32.xlu1 %v733_v40, %s778_s2 }
 0x212   :  { %v187_v43 = vpop.permute.xlu1 %186 }
 0x213   :  { %v189_v44 = vmul.f32 %v187_v43, %v169_v32 }
 0x215   :  { %192 = vrot.lane.b32.xlu1 %v189_v44, %s779_s13  ;;  %v26_v44 = vld [vmem:[%s996_s0 + $0x18] sm:$0xff] }
 0x216   :  { %689 = vmatmul.msk.f32.gmra.mxu0 %vm37_vm0, %v26_v44 }
 0x287   :  { %v193_v46 = vpop.permute.xlu1 %192 }
 0x288   :  { %696 = vmatmul.msk.f32.vlgmr.msrb.gmra.mxu2 %vm126_vm8, %v193_v46 }
 0x289   :  { %604 = vmatpush.msrb.mxu2 %v827_v3 }
 0x28b   :  { %605 = vmatpush.msrb.mxu2 %v837_v5 }
 0x28d   :  { %606 = vmatpush.msrb.mxu2 %v844_v6 }
 0x28f   :  { %607 = vmatpush.msrb.mxu2 %v852_v7 }
 0x30b   :  { %v213_v51 = vpop.f32.mrf.mxu2 }
 0x30c   :  { %v216_v52 = vadd.f32 %v213_v51, %v83_v50  ;;  %v88_v50 = vpop.f32.mrf.mxu0 }
 0x30d   :  { %v89_v51 = vadd.f32 %v878_v13, %v88_v50  ;;  %v95_v50 = vadd.f32 %v878_v13, %v873_v11 }
 0x30e   :  { %v217_v53 = vmul.f32 %v216_v52, %v881_v16 }
 0x310   :  { %v697_v54 = vmul.f32 -1.442695, %v217_v53 }
 0x312   :  { %734 = vpow2.f32 %v697_v54 }
 0x318   :  { %v735_v55 = vpop.eup %734 }
 0x319   :  { %v221_v56 = vadd.f32 1.0, %v735_v55 }
 0x31b   :  { %736 = vrcp.f32 %v221_v56  ;;  %v233_v60 = vand.u32 2147483648, %v221_v56  ;;  %v231_v62 = vand.u32 2147483647, %v221_v56  ;;  %vm227_vm10 = vweird.f32 %v221_v56 }
 0x31d   :  { %v234_v0 = vor.u32 1.1754944e-38, %v233_v60  ;;  %vm232_vm12 = vcmp.eq.f32.partialorder %v231_v62, 8.507059e+37 }
 0x321   :  { %v737_v57 = vpop.eup %736 }
 0x322   :  { %v223_v58 = vmul.f32 %v737_v57, %v221_v56  ;;  %vm228_vm9 = vweird.f32 %v737_v57 }
 0x323   :  { %vm229_vm11 = vmor %vm227_vm10, %vm228_vm9 }
 0x324   :  { %v224_v59 = vsub.f32 1.0, %v223_v58 }
 0x326   :  { %v225_v61 = vmul.f32 %v737_v57, %v224_v59 }
 0x328   :  { %v226_v63 = vadd.f32 %v737_v57, %v225_v61 }
 0x32a   :  { %v230_v1 = vsel %vm229_vm11, %v737_v57, %v226_v63 }
 0x32b   :  { %v235_v2 = vsel %vm232_vm12, %v234_v0, %v230_v1 }
 0x32c   :  { %v237_v3 = vmul.f32 2.0, %v235_v2  ;;  %v239_v7 = vmul.f32 %v235_v2, %v183_v39 }
 0x32e   :  { %v698_v4 = vadd.f32 -1.0, %v237_v3 }
 0x330   :  { %241 = vrot.lane.b32.xlu2 %v698_v4, %s778_s2 }
 0x38a   :  { %v242_v5 = vpop.permute.xlu2 %241 }
 0x38b   :  { %v244_v6 = vmul.f32 %v242_v5, %v235_v2 }
 0x38d   :  { %246 = vrot.lane.b32.xlu2 %v244_v6, %s779_s13 }
 0x3e7   :  { %v247_v8 = vpop.permute.xlu2 %246 }
 0x3e8   :  { %v249_v9 = vadd.f32 %v247_v8, %v239_v7 }
 0x3ea   :  { %738 = vtanh.f32 %v249_v9 }
 0x3f0   :  { %v739_v10 = vpop.eup %738 }
 0x3f1   :  { %252 = vrot.lane.b32.xlu0 %v739_v10, %s778_s2 }
 0x463   :  { %v253_v12 = vpop.permute.xlu0 %252 }
 0x464   :  { %v255_v14 = vmul.f32 %v253_v12, %v235_v2 }
 0x466   :  { %258 = vrot.lane.b32.xlu1 %v255_v14, %s779_s13 }
 0x4d8   :  { %v259_v17 = vpop.permute.xlu1 %258 }
 0x4d9   :  { %699 = vmatmul.msk.f32.vlgmr.msra.gmra.mxu3 %vm126_vm8, %v259_v17  ;;  %v27_v17 = vld [vmem:[%s996_s0 + $0x20] sm:$0xff] }
 0x4da   :  { %690 = vmatmul.msk.f32.gmra.mxu0 %vm37_vm0, %v27_v17 }
 0x55c   :  { %v279_v20 = vpop.f32.mrf.mxu3 }
 0x55d   :  { %v282_v21 = vadd.f32 %v279_v20, %v86_v19  ;;  %v91_v19 = vpop.f32.mrf.mxu0 }
 0x55e   :  { %v92_v20 = vadd.f32 %v878_v13, %v91_v19 }
 0x55f   :  { %v283_v22 = vmul.f32 %v282_v21, %v881_v16 }
 0x561   :  { %v700_v23 = vmul.f32 -1.442695, %v283_v22 }
 0x563   :  { %740 = vpow2.f32 %v700_v23 }
 0x569   :  { %v741_v24 = vpop.eup %740 }
 0x56a   :  { %v287_v25 = vadd.f32 1.0, %v741_v24 }
 0x56c   :  { %742 = vrcp.f32 %v287_v25  ;;  %v299_v29 = vand.u32 2147483648, %v287_v25  ;;  %v297_v31 = vand.u32 2147483647, %v287_v25  ;;  %vm293_vm14 = vweird.f32 %v287_v25 }
 0x56e   :  { %v300_v33 = vor.u32 1.1754944e-38, %v299_v29  ;;  %vm298_vm1 = vcmp.eq.f32.partialorder %v297_v31, 8.507059e+37 }
 0x572   :  { %v743_v26 = vpop.eup %742 }
 0x573   :  { %v289_v27 = vmul.f32 %v743_v26, %v287_v25  ;;  %vm294_vm13 = vweird.f32 %v743_v26 }
 0x574   :  { %vm295_vm15 = vmor %vm293_vm14, %vm294_vm13 }
 0x575   :  { %v290_v28 = vsub.f32 1.0, %v289_v27 }
 0x577   :  { %v291_v30 = vmul.f32 %v743_v26, %v290_v28 }
 0x579   :  { %v292_v32 = vadd.f32 %v743_v26, %v291_v30 }
 0x57b   :  { %v296_v34 = vsel %vm295_vm15, %v743_v26, %v292_v32 }
 0x57c   :  { %v301_v35 = vsel %vm298_vm1, %v300_v33, %v296_v34 }
 0x57d   :  { %v303_v36 = vmul.f32 2.0, %v301_v35  ;;  %v305_v40 = vmul.f32 %v301_v35, %v249_v9 }
 0x57f   :  { %v701_v37 = vadd.f32 -1.0, %v303_v36 }
 0x581   :  { %307 = vrot.lane.b32.xlu2 %v701_v37, %s778_s2 }
 0x5db   :  { %v308_v38 = vpop.permute.xlu2 %307 }
 0x5dc   :  { %v310_v39 = vmul.f32 %v308_v38, %v301_v35 }
 0x5de   :  { %312 = vrot.lane.b32.xlu0 %v310_v39, %s779_s13 }
 0x650   :  { %v313_v41 = vpop.permute.xlu0 %312 }
 0x651   :  { %v315_v42 = vadd.f32 %v313_v41, %v305_v40 }
 0x653   :  { %744 = vtanh.f32 %v315_v42 }
 0x659   :  { %v745_v43 = vpop.eup %744 }
 0x65a   :  { %318 = vrot.lane.b32.xlu1 %v745_v43, %s778_s2 }
 0x6cc   :  { %v319_v45 = vpop.permute.xlu1 %318 }
 0x6cd   :  { %v321_v46 = vmul.f32 %v319_v45, %v301_v35 }
 0x6cf   :  { %324 = vrot.lane.b32.xlu2 %v321_v46, %s779_s13 }
 0x729   :  { %v325_v49 = vpop.permute.xlu2 %324 }
 0x72a   :  { %702 = vmatmul.msk.f32.vlgmr.msra.gmra.mxu1 %vm126_vm8, %v325_v49 }
 0x7a7   :  { %v345_v52 = vpop.f32.mrf.mxu1 }
 0x7a8   :  { %v348_v53 = vadd.f32 %v345_v52, %v89_v51 }
 0x7aa   :  { %v349_v54 = vmul.f32 %v348_v53, %v881_v16 }
 0x7ac   :  { %v703_v55 = vmul.f32 -1.442695, %v349_v54 }
 0x7ae   :  { %746 = vpow2.f32 %v703_v55 }
 0x7b4   :  { %v747_v56 = vpop.eup %746 }
 0x7b5   :  { %v353_v57 = vadd.f32 1.0, %v747_v56 }
 0x7b7   :  { %748 = vrcp.f32 %v353_v57  ;;  %v365_v61 = vand.u32 2147483648, %v353_v57  ;;  %v363_v63 = vand.u32 2147483647, %v353_v57  ;;  %vm359_vm3 = vweird.f32 %v353_v57 }
 0x7b9   :  { %v366_v1 = vor.u32 1.1754944e-38, %v365_v61  ;;  %vm364_vm5 = vcmp.eq.f32.partialorder %v363_v63, 8.507059e+37 }
 0x7bd   :  { %v749_v58 = vpop.eup %748 }
 0x7be   :  { %v355_v59 = vmul.f32 %v749_v58, %v353_v57  ;;  %vm360_vm2 = vweird.f32 %v749_v58 }
 0x7bf   :  { %vm361_vm4 = vmor %vm359_vm3, %vm360_vm2 }
 0x7c0   :  { %v356_v60 = vsub.f32 1.0, %v355_v59 }
 0x7c2   :  { %v357_v62 = vmul.f32 %v749_v58, %v356_v60 }
 0x7c4   :  { %v358_v0 = vadd.f32 %v749_v58, %v357_v62 }
 0x7c6   :  { %v362_v2 = vsel %vm361_vm4, %v749_v58, %v358_v0 }
 0x7c7   :  { %v367_v3 = vsel %vm364_vm5, %v366_v1, %v362_v2 }
 0x7c8   :  { %v369_v4 = vmul.f32 2.0, %v367_v3  ;;  %v371_v8 = vmul.f32 %v367_v3, %v315_v42 }
 0x7ca   :  { %v704_v5 = vadd.f32 -1.0, %v369_v4 }
 0x7cc   :  { %373 = vrot.lane.b32.xlu0 %v704_v5, %s778_s2 }
 0x83e   :  { %v374_v6 = vpop.permute.xlu0 %373 }
 0x83f   :  { %v376_v7 = vmul.f32 %v374_v6, %v367_v3 }
 0x841   :  { %378 = vrot.lane.b32.xlu1 %v376_v7, %s779_s13 }
 0x8b3   :  { %v379_v9 = vpop.permute.xlu1 %378 }
 0x8b4   :  { %v381_v10 = vadd.f32 %v379_v9, %v371_v8 }
 0x8b6   :  { %750 = vtanh.f32 %v381_v10 }
 0x8bc   :  { %v751_v12 = vpop.eup %750 }
 0x8bd   :  { %384 = vrot.lane.b32.xlu2 %v751_v12, %s778_s2 }
 0x917   :  { %v385_v14 = vpop.permute.xlu2 %384 }
 0x918   :  { %v387_v15 = vmul.f32 %v385_v14, %v367_v3 }
 0x91a   :  { %390 = vrot.lane.b32.xlu0 %v387_v15, %s779_s13  ;;  %v98_v15 = vadd.f32 %v878_v13, %v909_v47 }
 0x98c   :  { %v391_v18 = vpop.permute.xlu0 %390 }
 0x98d   :  { %705 = vmatmul.msk.f32.vlgmr.msra.gmra.mxu2 %vm126_vm8, %v391_v18 }
 0xa10   :  { %v411_v21 = vpop.f32.mrf.mxu2 }
 0xa11   :  { %v414_v22 = vadd.f32 %v411_v21, %v92_v20 }
 0xa13   :  { %v415_v23 = vmul.f32 %v414_v22, %v881_v16 }
 0xa15   :  { %v706_v24 = vmul.f32 -1.442695, %v415_v23 }
 0xa17   :  { %752 = vpow2.f32 %v706_v24 }
 0xa1d   :  { %v753_v25 = vpop.eup %752 }
 0xa1e   :  { %v419_v26 = vadd.f32 1.0, %v753_v25 }
 0xa20   :  { %754 = vrcp.f32 %v419_v26  ;;  %v431_v30 = vand.u32 2147483648, %v419_v26  ;;  %v429_v32 = vand.u32 2147483647, %v419_v26  ;;  %vm425_vm6 = vweird.f32 %v419_v26 }
 0xa22   :  { %v432_v34 = vor.u32 1.1754944e-38, %v431_v30  ;;  %vm430_vm9 = vcmp.eq.f32.partialorder %v429_v32, 8.507059e+37 }
 0xa26   :  { %v755_v27 = vpop.eup %754 }
 0xa27   :  { %v421_v28 = vmul.f32 %v755_v27, %v419_v26  ;;  %vm426_vm0 = vweird.f32 %v755_v27 }
 0xa28   :  { %vm427_vm7 = vmor %vm425_vm6, %vm426_vm0 }
 0xa29   :  { %v422_v29 = vsub.f32 1.0, %v421_v28 }
 0xa2b   :  { %v423_v31 = vmul.f32 %v755_v27, %v422_v29 }
 0xa2d   :  { %v424_v33 = vadd.f32 %v755_v27, %v423_v31 }
 0xa2f   :  { %v428_v35 = vsel %vm427_vm7, %v755_v27, %v424_v33 }
 0xa30   :  { %v433_v36 = vsel %vm430_vm9, %v432_v34, %v428_v35 }
 0xa31   :  { %v435_v37 = vmul.f32 2.0, %v433_v36  ;;  %v437_v41 = vmul.f32 %v433_v36, %v381_v10 }
 0xa33   :  { %v707_v38 = vadd.f32 -1.0, %v435_v37 }
 0xa35   :  { %439 = vrot.lane.b32.xlu1 %v707_v38, %s778_s2 }
 0xaa7   :  { %v440_v39 = vpop.permute.xlu1 %439 }
 0xaa8   :  { %v442_v40 = vmul.f32 %v440_v39, %v433_v36 }
 0xaaa   :  { %444 = vrot.lane.b32.xlu2 %v442_v40, %s779_s13 }
 0xb04   :  { %v445_v42 = vpop.permute.xlu2 %444 }
 0xb05   :  { %v447_v43 = vadd.f32 %v445_v42, %v437_v41 }
 0xb07   :  { %756 = vtanh.f32 %v447_v43 }
 0xb0d   :  { %v757_v44 = vpop.eup %756 }
 0xb0e   :  { %450 = vrot.lane.b32.xlu0 %v757_v44, %s778_s2 }
 0xb80   :  { %v451_v45 = vpop.permute.xlu0 %450 }
 0xb81   :  { %v453_v46 = vmul.f32 %v451_v45, %v433_v36 }
 0xb83   :  { %456 = vrot.lane.b32.xlu1 %v453_v46, %s779_s13 }
 0xbf5   :  { %v457_v49 = vpop.permute.xlu1 %456 }
 0xbf6   :  { %708 = vmatmul.msk.f32.vlgmr.msrb.gmra.mxu3 %vm126_vm8, %v457_v49 }
 0xc79   :  { %v477_v51 = vpop.f32.mrf.mxu3 }
 0xc7a   :  { %v480_v52 = vadd.f32 %v477_v51, %v95_v50 }
 0xc7c   :  { %v481_v53 = vmul.f32 %v480_v52, %v881_v16 }
 0xc7e   :  { %v709_v54 = vmul.f32 -1.442695, %v481_v53 }
 0xc80   :  { %758 = vpow2.f32 %v709_v54 }
 0xc86   :  { %v759_v55 = vpop.eup %758 }
 0xc87   :  { %v485_v56 = vadd.f32 1.0, %v759_v55 }
 0xc89   :  { %760 = vrcp.f32 %v485_v56  ;;  %v497_v60 = vand.u32 2147483648, %v485_v56  ;;  %v495_v62 = vand.u32 2147483647, %v485_v56  ;;  %vm491_vm11 = vweird.f32 %v485_v56 }
 0xc8b   :  { %v498_v11 = vor.u32 1.1754944e-38, %v497_v60  ;;  %vm496_vm13 = vcmp.eq.f32.partialorder %v495_v62, 8.507059e+37 }
 0xc8f   :  { %v761_v57 = vpop.eup %760 }
 0xc90   :  { %v487_v58 = vmul.f32 %v761_v57, %v485_v56  ;;  %vm492_vm10 = vweird.f32 %v761_v57 }
 0xc91   :  { %vm493_vm12 = vmor %vm491_vm11, %vm492_vm10 }
 0xc92   :  { %v488_v59 = vsub.f32 1.0, %v487_v58 }
 0xc94   :  { %v489_v61 = vmul.f32 %v761_v57, %v488_v59 }
 0xc96   :  { %v490_v63 = vadd.f32 %v761_v57, %v489_v61 }
 0xc98   :  { %v494_v0 = vsel %vm493_vm12, %v761_v57, %v490_v63 }
 0xc99   :  { %v499_v1 = vsel %vm496_vm13, %v498_v11, %v494_v0 }
 0xc9a   :  { %v501_v2 = vmul.f32 2.0, %v499_v1  ;;  %v503_v6 = vmul.f32 %v499_v1, %v447_v43  ;;  %v101_v43 = vadd.f32 %v878_v13, %v911_v48 }
 0xc9c   :  { %v710_v3 = vadd.f32 -1.0, %v501_v2  ;;  %v118_v2 = vld [vmem:[%s999_s4 + $0x18] sm:$0xff] }
 0xc9d   :  { %673 = vmatpush.msra.mxu3 %v118_v2 }
 0xc9e   :  { %505 = vrot.lane.b32.xlu2 %v710_v3, %s778_s2  ;;  %v117_v3 = vld [vmem:[%s999_s4 + $0x10] sm:$0xff] }
 0xc9f   :  { %674 = vmatpush.msra.mxu3 %v117_v3 }
 0xcf8   :  { %v506_v4 = vpop.permute.xlu2 %505 }
 0xcf9   :  { %v508_v5 = vmul.f32 %v506_v4, %v499_v1  ;;  %v116_v4 = vld [vmem:[%s999_s4 + $0x8] sm:$0xff] }
 0xcfa   :  { %675 = vmatpush.msra.mxu3 %v116_v4 }
 0xcfb   :  { %510 = vrot.lane.b32.xlu0 %v508_v5, %s779_s13  ;;  %v115_v5 = vld [vmem:[%s999_s4] sm:$0xff] }
 0xcfc   :  { %676 = vmatpush.msra.mxu3 %v115_v5 }
 0xd6d   :  { %v511_v7 = vpop.permute.xlu0 %510 }
 0xd6e   :  { %v513_v8 = vadd.f32 %v511_v7, %v503_v6 }
 0xd70   :  { %762 = vtanh.f32 %v513_v8 }
 0xd76   :  { %v763_v9 = vpop.eup %762 }
 0xd77   :  { %516 = vrot.lane.b32.xlu1 %v763_v9, %s778_s2  ;;  %v727_v9 = vld [vmem:[%s1000_s5] ss:$0 sm:$0xff] }
 0xde9   :  { %v517_v10 = vpop.permute.xlu1 %516 }
 0xdea   :  { %v519_v12 = vmul.f32 %v517_v10, %v499_v1 }
 0xdec   :  { %522 = vrot.lane.b32.xlu2 %v519_v12, %s779_s13 }
 0xe46   :  { %v523_v14 = vpop.permute.xlu2 %522 }
 0xe47   :  { %711 = vmatmul.msk.f32.vlgmr.msrb.gmra.mxu1 %vm126_vm8, %v523_v14 }
 0xec4   :  { %v543_v17 = vpop.f32.mrf.mxu1 }
 0xec5   :  { %v546_v18 = vadd.f32 %v543_v17, %v98_v15 }
 0xec7   :  { %v547_v19 = vmul.f32 %v546_v18, %v881_v16 }
 0xec9   :  { %v712_v20 = vmul.f32 -1.442695, %v547_v19 }
 0xecb   :  { %764 = vpow2.f32 %v712_v20 }
 0xed1   :  { %v765_v21 = vpop.eup %764 }
 0xed2   :  { %v551_v22 = vadd.f32 1.0, %v765_v21 }
 0xed4   :  { %766 = vrcp.f32 %v551_v22  ;;  %v563_v26 = vand.u32 2147483648, %v551_v22  ;;  %v561_v28 = vand.u32 2147483647, %v551_v22  ;;  %vm557_vm15 = vweird.f32 %v551_v22 }
 0xed6   :  { %v564_v47 = vor.u32 1.1754944e-38, %v563_v26  ;;  %vm562_vm2 = vcmp.eq.f32.partialorder %v561_v28, 8.507059e+37 }
 0xeda   :  { %v767_v23 = vpop.eup %766 }
 0xedb   :  { %v553_v24 = vmul.f32 %v767_v23, %v551_v22  ;;  %vm558_vm14 = vweird.f32 %v767_v23 }
 0xedc   :  { %vm559_vm1 = vmor %vm557_vm15, %vm558_vm14 }
 0xedd   :  { %v554_v25 = vsub.f32 1.0, %v553_v24 }
 0xedf   :  { %v555_v27 = vmul.f32 %v767_v23, %v554_v25 }
 0xee1   :  { %v556_v29 = vadd.f32 %v767_v23, %v555_v27 }
 0xee3   :  { %v560_v30 = vsel %vm559_vm1, %v767_v23, %v556_v29 }
 0xee4   :  { %v565_v31 = vsel %vm562_vm2, %v564_v47, %v560_v30 }
 0xee5   :  { %v567_v32 = vmul.f32 2.0, %v565_v31  ;;  %v569_v36 = vmul.f32 %v565_v31, %v513_v8 }
 0xee7   :  { %v713_v33 = vadd.f32 -1.0, %v567_v32 }
 0xee9   :  { %571 = vrot.lane.b32.xlu0 %v713_v33, %s778_s2 }
 0xf5b   :  { %v572_v34 = vpop.permute.xlu0 %571 }
 0xf5c   :  { %v574_v35 = vmul.f32 %v572_v34, %v565_v31 }
 0xf5e   :  { %576 = vrot.lane.b32.xlu1 %v574_v35, %s779_s13 }
 0xfd0   :  { %v577_v37 = vpop.permute.xlu1 %576 }
 0xfd1   :  { %v579_v38 = vadd.f32 %v577_v37, %v569_v36 }
 0xfd3   :  { %768 = vtanh.f32 %v579_v38 }
 0xfd9   :  { %v769_v39 = vpop.eup %768 }
 0xfda   :  { %582 = vrot.lane.b32.xlu2 %v769_v39, %s778_s2 }
0x1034   :  { %v583_v40 = vpop.permute.xlu2 %582 }
0x1035   :  { %v585_v41 = vmul.f32 %v583_v40, %v565_v31 }
0x1037   :  { %588 = vrot.lane.b32.xlu0 %v585_v41, %s779_s13 }
0x10a9   :  { %v589_v42 = vpop.permute.xlu0 %588 }
0x10aa   :  { %714 = vmatmul.msk.f32.vlgmr.msrb.gmra.mxu2 %vm126_vm8, %v589_v42 }
0x112d   :  { %v609_v44 = vpop.f32.mrf.mxu2 }
0x112e   :  { %v612_v45 = vadd.f32 %v609_v44, %v101_v43 }
0x1130   :  { %v613_v46 = vmul.f32 %v612_v45, %v881_v16 }
0x1132   :  { %v715_v49 = vmul.f32 -1.442695, %v613_v46 }
0x1134   :  { %770 = vpow2.f32 %v715_v49 }
0x113a   :  { %v771_v50 = vpop.eup %770 }
0x113b   :  { %v617_v51 = vadd.f32 1.0, %v771_v50 }
0x113d   :  { %772 = vrcp.f32 %v617_v51  ;;  %v629_v55 = vand.u32 2147483648, %v617_v51  ;;  %v627_v57 = vand.u32 2147483647, %v617_v51  ;;  %vm623_vm4 = vweird.f32 %v617_v51 }
0x113f   :  { %v630_v13 = vor.u32 1.1754944e-38, %v629_v55  ;;  %vm628_vm0 = vcmp.eq.f32.partialorder %v627_v57, 8.507059e+37 }
0x1143   :  { %v773_v52 = vpop.eup %772 }
0x1144   :  { %v619_v53 = vmul.f32 %v773_v52, %v617_v51  ;;  %vm624_vm3 = vweird.f32 %v773_v52 }
0x1145   :  { %vm625_vm5 = vmor %vm623_vm4, %vm624_vm3 }
0x1146   :  { %v620_v54 = vsub.f32 1.0, %v619_v53 }
0x1148   :  { %v621_v56 = vmul.f32 %v773_v52, %v620_v54 }
0x114a   :  { %v622_v58 = vadd.f32 %v773_v52, %v621_v56 }
0x114c   :  { %v626_v48 = vsel %vm625_vm5, %v773_v52, %v622_v58 }
0x114d   :  { %v631_v59 = vsel %vm628_vm0, %v630_v13, %v626_v48 }
0x114e   :  { %v633_v16 = vmul.f32 2.0, %v631_v59  ;;  %v635_v63 = vmul.f32 %v631_v59, %v579_v38 }
0x1150   :  { %v716_v60 = vadd.f32 -1.0, %v633_v16 }
0x1152   :  { %637 = vrot.lane.b32.xlu1 %v716_v60, %s778_s2 }
0x11c4   :  { %v638_v61 = vpop.permute.xlu1 %637 }
0x11c5   :  { %v640_v62 = vmul.f32 %v638_v61, %v631_v59 }
0x11c7   :  { %642 = vrot.lane.b32.xlu2 %v640_v62, %s779_s13 }
0x1221   :  { %v643_v11 = vpop.permute.xlu2 %642 }
0x1222   :  { %v645_v0 = vadd.f32 %v643_v11, %v635_v63 }
0x1224   :  { %774 = vtanh.f32 %v645_v0 }
0x122a   :  { %v775_v1 = vpop.eup %774 }
0x122b   :  { %648 = vrot.lane.b32.xlu0 %v775_v1, %s778_s2 }
0x129d   :  { %v649_v6 = vpop.permute.xlu0 %648 }
0x129e   :  { %v651_v7 = vmul.f32 %v649_v6, %v631_v59 }
0x12a0   :  { %657 = vrot.lane.b32.xlu1 %v651_v7, %s779_s13 }
0x1312   :  { %v658_v8 = vpop.permute.xlu1 %657 }
0x1313   :  { %717 = vmatmul.msk.f32.vlgmr.msra.gmra.mxu3 %vm126_vm8, %v658_v8 }
0x1396   :  { %v678_v10 = vpop.f32.mrf.mxu3 }
0x1397   :  { %v679_v12 = vadd.f32 %v727_v9, %v678_v10 }
0x1399   :  { %681 = vst [vmem:[%s1001_s6] sm:$0xff] %v679_v12 }

</bundles_post_ra>
